<compile_context>
chip_gen: v6e
topology: v6e:2x2x1
jax: 0.10.0
libtpu: 0.0.40
codegen_flags: <defaults>
</compile_context>

<pallas_src>
import functools

import jax
import jax.numpy as jnp
from jax.experimental import pallas as pl
from jax.experimental.pallas import tpu as pltpu


def _round_up(x, m):
    return (x + m - 1) // m * m


def _pick_tile(dim, target, align=128):
    """Largest `align`-multiple tile <= target that evenly divides `dim`.
    Falls back to the full dim (no tiling) when dim is small or indivisible."""
    if dim <= target:
        return dim
    t = (target // align) * align
    while t >= align:
        if dim % t == 0:
            return t
        t -= align
    return dim


# ---------------------------------------------------------------------------
# Fused path: whole MLP in one pallas_call (weights VMEM-resident).
# ---------------------------------------------------------------------------

_FUSED_VMEM_BUDGET = 24 * 1024 * 1024  # conservative vs v7x's 64 MiB physical VMEM


def _fused_mlp_kernel(*refs, layer_specs, eps, compute_dtype):
    """refs = [x_tile, (wT, b[, gamma, beta]) per layer ..., out_tile].

    layer_specs: tuple of (relu, layer_norm) per layer; grid tiles rows only,
    so each grid step computes the full layer stack for its row tile with all
    intermediates kept in VMEM / vregs.
    """
    x_ref = refs[0]
    o_ref = refs[-1]
    params = refs[1:-1]

    h = x_ref[...]
    idx = 0
    for relu, layer_norm in layer_specs:
        w_ref, b_ref = params[idx], params[idx + 1]
        idx += 2
        y = jnp.dot(h.astype(compute_dtype), w_ref[...],
                    preferred_element_type=jnp.float32)
        y = y + b_ref[...].astype(jnp.float32)
        if relu:
            y = jnp.maximum(y, 0.0)
        if layer_norm:
            g_ref, be_ref = params[idx], params[idx + 1]
            idx += 2
            # One-pass moments: var = E[y^2] - mu^2.
            mu = jnp.mean(y, axis=-1, keepdims=True)
            var = jnp.mean(y * y, axis=-1, keepdims=True) - mu * mu
            y = (y - mu) * jax.lax.rsqrt(var + eps)
            y = y * g_ref[...].astype(jnp.float32) + be_ref[...].astype(jnp.float32)
        h = y
    o_ref[...] = h.astype(o_ref.dtype)


def _fused_vmem_bytes(tm, prepared):
    """Rough VMEM footprint of the fused kernel (double buffering included)."""
    w_itemsize = jnp.dtype(prepared["wT"][0].dtype).itemsize
    w_bytes = sum(w.shape[0] * w.shape[1] for w in prepared["wT"]) * w_itemsize
    vec_bytes = sum(w.shape[1] for w in prepared["wT"]) * 4 * 3
    k0 = prepared["wT"][0].shape[0]
    n_last = prepared["wT"][-1].shape[1]
    max_n = max(w.shape[1] for w in prepared["wT"])
    io_bytes = 2 * tm * (k0 * w_itemsize + n_last * 4)   # double-buffered x / out tiles
    live_bytes = 2 * tm * max_n * 4                      # f32 intermediate activations
    return 2 * (w_bytes + vec_bytes) + io_bytes + live_bytes


def _choose_fused_tm(M, prepared, tm_target=512):
    """Largest row tile whose fused-kernel footprint fits the VMEM budget,
    or None if the fused path should not be used."""
    if M <= tm_target:
        tm = _round_up(M, 32)      # 32 satisfies any dtype's min sublane tile
        return tm if _fused_vmem_bytes(tm, prepared) <= _FUSED_VMEM_BUDGET else None
    for tm in (512, 256, 128):
        if _fused_vmem_bytes(tm, prepared) <= _FUSED_VMEM_BUDGET:
            return tm
    return None


def mlp_fused(x2d, prepared, *, if_layer_norm, out_dtype, tm, eps=1e-5):
    """Whole MLP as a single pallas_call. x2d: (M, K0) in the compute dtype."""
    M, K0 = x2d.shape
    wTs = prepared["wT"]
    num_layers = len(wTs)
    n_last = wTs[-1].shape[1]
    compute_dtype = wTs[0].dtype

    Mp = _round_up(M, tm)
    if Mp != M:
        x2d = jnp.pad(x2d, ((0, Mp - M), (0, 0)))

    inputs = [x2d]
    in_specs = [pl.BlockSpec((tm, K0), lambda i: (i, 0))]
    layer_specs = []
    for li in range(num_layers):
        is_last = li == num_layers - 1
        wT = wTs[li]
        K, N = wT.shape
        b2 = prepared["b"][li].reshape(1, N)
        inputs += [wT, b2]
        in_specs += [pl.BlockSpec((K, N), lambda i: (0, 0)),
                     pl.BlockSpec((1, N), lambda i: (0, 0))]
        ln = bool(if_layer_norm and not is_last)
        if ln:
            inputs += [prepared["ln_g"][li].reshape(1, N),
                       prepared["ln_b"][li].reshape(1, N)]
            in_specs += [pl.BlockSpec((1, N), lambda i: (0, 0)),
                         pl.BlockSpec((1, N), lambda i: (0, 0))]
        layer_specs.append((not is_last, ln))

    kernel = functools.partial(_fused_mlp_kernel, layer_specs=tuple(layer_specs),
                               eps=eps, compute_dtype=compute_dtype)

    w_itemsize = jnp.dtype(compute_dtype).itemsize
    cost = pl.CostEstimate(
        flops=2 * Mp * sum(w.shape[0] * w.shape[1] for w in wTs),
        transcendentals=Mp * sum(1 for (_, ln) in layer_specs if ln),
        bytes_accessed=(Mp * K0 * jnp.dtype(x2d.dtype).itemsize
                        + sum(w.shape[0] * w.shape[1] for w in wTs) * w_itemsize
                        + Mp * n_last * jnp.dtype(out_dtype).itemsize),
    )

    out = pl.pallas_call(
        kernel,
        out_shape=jax.ShapeDtypeStruct((Mp, n_last), out_dtype),
        grid_spec=pltpu.PrefetchScalarGridSpec(
            num_scalar_prefetch=0,
            grid=(Mp // tm,),
            in_specs=in_specs,
            out_specs=pl.BlockSpec((tm, n_last), lambda i: (i, 0)),
        ),
        compiler_params=pltpu.CompilerParams(
            dimension_semantics=("parallel",),
            vmem_limit_bytes=64 * 1024 * 1024,
        ),
        cost_estimate=cost,
    )(*inputs)

    return out[:M] if Mp != M else out


# ---------------------------------------------------------------------------
# Fallback path: one tiled pallas_call per layer (M/N/K grid, K-axis acc).
# ---------------------------------------------------------------------------

def _layer_kernel(x_ref, w_ref, b_ref, g_ref, be_ref, o_ref, acc_ref, *,
                  relu, layer_norm, eps):
    """One grid step of Linear (+ReLU)(+LayerNorm).

    Grid = (row tiles i, out-col tiles j, reduction tiles k), k innermost.
    acc_ref: (tm, tn) f32 VMEM accumulator carried across the k axis.
    """
    k = pl.program_id(2)

    @pl.when(k == 0)
    def _():
        acc_ref[...] = jnp.zeros_like(acc_ref)

    acc_ref[...] += jnp.dot(x_ref[...], w_ref[...],
                            preferred_element_type=jnp.float32)

    @pl.when(k == pl.num_programs(2) - 1)
    def _():
        y = acc_ref[...] + b_ref[...].astype(jnp.float32)
        if relu:
            y = jnp.maximum(y, 0.0)
        if layer_norm:
            mu = jnp.mean(y, axis=-1, keepdims=True)
            var = jnp.mean(y * y, axis=-1, keepdims=True) - mu * mu
            y = (y - mu) * jax.lax.rsqrt(var + eps)
            y = y * g_ref[...].astype(jnp.float32) + be_ref[...].astype(jnp.float32)
        o_ref[...] = y.astype(o_ref.dtype)


def mlp_layer(x2d, wT, b, gamma, beta, *, relu, layer_norm, out_dtype,
              eps=1e-5, tm=256, tn_target=512, tk_target=1024):
    """One Linear (+ReLU)(+LayerNorm) layer as a single tiled Pallas kernel.

    x2d: (M, K) activations; wT: (K, N) pre-transposed weight; b/gamma/beta: (N,).
    """
    M, K = x2d.shape
    K2, N = wT.shape
    assert K == K2

    if M < tm:
        tm = _round_up(M, 32)
    Mp = _round_up(M, tm)
    if Mp != M:
        x2d = jnp.pad(x2d, ((0, Mp - M), (0, 0)))

    # LayerNorm needs the whole output row resident for its reduction.
    tn = N if layer_norm else _pick_tile(N, tn_target)
    tk_budget = tk_target
    if layer_norm:
        w_bytes = jnp.dtype(wT.dtype).itemsize
        tk_budget = max(128, min(tk_target, (8 * 1024 * 1024) // max(1, N * w_bytes)))
    tk = _pick_tile(K, tk_budget)

    grid = (Mp // tm, N // tn, K // tk)

    b2 = b.reshape(1, N)
    g2 = gamma.reshape(1, N)
    be2 = beta.reshape(1, N)

    kernel = functools.partial(_layer_kernel, relu=relu,
                               layer_norm=layer_norm, eps=eps)

    cost = pl.CostEstimate(
        flops=2 * Mp * K * N,
        transcendentals=(Mp if layer_norm else 0),
        bytes_accessed=(Mp * K * jnp.dtype(x2d.dtype).itemsize
                        + K * N * jnp.dtype(wT.dtype).itemsize
                        + Mp * N * jnp.dtype(out_dtype).itemsize),
    )

    out = pl.pallas_call(
        kernel,
        out_shape=jax.ShapeDtypeStruct((Mp, N), out_dtype),
        grid_spec=pltpu.PrefetchScalarGridSpec(
            num_scalar_prefetch=0,
            grid=grid,
            in_specs=[
                pl.BlockSpec((tm, tk), lambda i, j, k: (i, k)),   # x tile
                pl.BlockSpec((tk, tn), lambda i, j, k: (k, j)),   # weight tile
                pl.BlockSpec((1, tn), lambda i, j, k: (0, j)),    # bias
                pl.BlockSpec((1, tn), lambda i, j, k: (0, j)),    # LN gamma
                pl.BlockSpec((1, tn), lambda i, j, k: (0, j)),    # LN beta
            ],
            out_specs=pl.BlockSpec((tm, tn), lambda i, j, k: (i, j)),
            scratch_shapes=[pltpu.VMEM((tm, tn), jnp.float32)],
        ),
        compiler_params=pltpu.CompilerParams(
            dimension_semantics=("parallel", "parallel", "arbitrary"),
            vmem_limit_bytes=64 * 1024 * 1024,
        ),
        cost_estimate=cost,
    )(x2d, wT, b2, g2, be2)

    return out[:M] if Mp != M else out


# ---------------------------------------------------------------------------
# Forward / params.
# ---------------------------------------------------------------------------

def mlp_forward(x, prepared, *, if_layer_norm, use_fused=None):
    """Reproduces MLP.forward: ReLU on all but last layer; optional LayerNorm
    after ReLU on all but last layer. `prepared` comes from prepare_mlp_params.
    use_fused: None = auto (fused single kernel when weights fit VMEM)."""
    orig_shape = x.shape
    out_dtype = x.dtype
    x2d = x.reshape(-1, orig_shape[-1])

    compute_dtype = prepared["wT"][0].dtype
    h = x2d.astype(compute_dtype)
    M = h.shape[0]

    fused_tm = _choose_fused_tm(M, prepared)
    if use_fused is None:
        use_fused = fused_tm is not None
    if use_fused and fused_tm is None:
        use_fused = False

    if use_fused:
        out = mlp_fused(h, prepared, if_layer_norm=if_layer_norm,
                        out_dtype=out_dtype, tm=fused_tm)
    else:
        num_layers = len(prepared["wT"])
        for i in range(num_layers):
            is_last = i == num_layers - 1
            h = mlp_layer(
                h,
                prepared["wT"][i],
                prepared["b"][i],
                prepared["ln_g"][i],
                prepared["ln_b"][i],
                relu=not is_last,
                layer_norm=(if_layer_norm and not is_last),
                out_dtype=(out_dtype if is_last else compute_dtype),
            )
        out = h

    out_dim = prepared["wT"][-1].shape[1]
    return out.reshape(orig_shape[:-1] + (out_dim,))


def init_mlp_params(key, input_dim, hidden_dim, output_dim, num_layers):
    """Deterministic init matching nn.Linear's default U(-1/sqrt(fan_in), ..)
    and nn.LayerNorm's (ones, zeros). PyTorch layout: weight = (out, in)."""
    h = [hidden_dim] * (num_layers - 1)
    dims_in = [input_dim] + h
    dims_out = h + [output_dim]

    ws, bs, gs, bes = [], [], [], []
    for n_in, n_out in zip(dims_in, dims_out):
        key, kw, kb = jax.random.split(key, 3)
        bound = 1.0 / jnp.sqrt(jnp.float32(n_in))
        ws.append(jax.random.uniform(kw, (n_out, n_in), jnp.float32, -bound, bound))
        bs.append(jax.random.uniform(kb, (n_out,), jnp.float32, -bound, bound))
        gs.append(jnp.ones((n_out,), jnp.float32))
        bes.append(jnp.zeros((n_out,), jnp.float32))
    return {"w": ws, "b": bs, "ln_g": gs, "ln_b": bes}


def prepare_mlp_params(params, compute_dtype=jnp.bfloat16):
    """One-time prep: transpose weights to (K, N) and cast to the MXU dtype.
    Bias / LayerNorm params stay f32 (epilogue runs in f32)."""
    return {
        "wT": [jnp.transpose(w).astype(compute_dtype) for w in params["w"]],
        "b": [b.astype(jnp.float32) for b in params["b"]],
        "ln_g": [g.astype(jnp.float32) for g in params["ln_g"]],
        "ln_b": [b.astype(jnp.float32) for b in params["ln_b"]],
    }


def _reference(x, params, if_layer_norm):
    ref = x.reshape(-1, x.shape[-1]).astype(jnp.float32)
    n = len(params["w"])
    for i in range(n):
        ref = ref @ params["w"][i].T + params["b"][i]
        if i < n - 1:
            ref = jnp.maximum(ref, 0.0)
            if if_layer_norm:
                mu = jnp.mean(ref, -1, keepdims=True)
                var = jnp.mean(jnp.square(ref - mu), -1, keepdims=True)
                ref = (ref - mu) * jax.lax.rsqrt(var + 1e-5)
                ref = ref * params["ln_g"][i] + params["ln_b"][i]
    return ref.reshape(x.shape[:-1] + (params["w"][-1].shape[0],))


if __name__ == "__main__":
    key = jax.random.PRNGKey(0)
    kx, kp = jax.random.split(key)

    B, S = 2, 8
    input_dim, hidden_dim, output_dim, num_layers = 16, 32, 16, 3

    x = jax.random.normal(kx, (B, S, input_dim), jnp.float32)
    params = init_mlp_params(kp, input_dim, hidden_dim, output_dim, num_layers)

    for if_layer_norm in (True, False):
        ref = _reference(x, params, if_layer_norm)

        # Fast path (auto → fused single kernel): bf16 MXU operands, f32 epilogue.
        prepared_bf16 = prepare_mlp_params(params, jnp.bfloat16)
        out_bf16 = jax.jit(functools.partial(mlp_forward, if_layer_norm=if_layer_norm))(
            x, prepared_bf16)
        jax.block_until_ready(out_bf16)
        assert out_bf16.shape == ref.shape
        assert jnp.allclose(out_bf16, ref, atol=1e-1, rtol=1e-1), "bf16 fused mismatch"

        # Full-precision fused path: tight check against the pure-JAX reference.
        prepared_f32 = prepare_mlp_params(params, jnp.float32)
        out_f32 = jax.jit(functools.partial(mlp_forward, if_layer_norm=if_layer_norm))(
            x, prepared_f32)
        jax.block_until_ready(out_f32)
        assert jnp.allclose(out_f32, ref, atol=1e-5, rtol=1e-5), "f32 fused mismatch"

        # Also exercise the tiled per-layer fallback path (used for big MLPs).
        out_pl = jax.jit(functools.partial(mlp_forward, if_layer_norm=if_layer_norm,
                                           use_fused=False))(x, prepared_f32)
        jax.block_until_ready(out_pl)
        assert jnp.allclose(out_pl, ref, atol=1e-5, rtol=1e-5), "per-layer mismatch"

    # TODO(synk): pad the final output feature dim to a multiple of 128 lanes
    # (then slice in the wrapper) to get unmasked lane-dense stores when
    # output_dim is small; left as-is since output_dim is module-defined.
    print("KERNEL_OK")
</pallas_src>

<mosaic_0001>
module attributes {stable_mosaic.version = 11 : i64} {
  func.func @_fused_mlp_kernel(%arg0: i32, %arg1: memref<32x16xbf16, #tpu.memory_space<vmem>>, %arg2: memref<16x32xbf16, #tpu.memory_space<vmem>>, %arg3: memref<1x32xf32, #tpu.memory_space<vmem>>, %arg4: memref<1x32xf32, #tpu.memory_space<vmem>>, %arg5: memref<1x32xf32, #tpu.memory_space<vmem>>, %arg6: memref<32x32xbf16, #tpu.memory_space<vmem>>, %arg7: memref<1x32xf32, #tpu.memory_space<vmem>>, %arg8: memref<1x32xf32, #tpu.memory_space<vmem>>, %arg9: memref<1x32xf32, #tpu.memory_space<vmem>>, %arg10: memref<32x16xbf16, #tpu.memory_space<vmem>>, %arg11: memref<1x16xf32, #tpu.memory_space<vmem>>, %arg12: memref<32x16xf32, #tpu.memory_space<vmem>>) attributes {dimension_semantics = [#tpu.dimension_semantics<parallel>], iteration_bounds = array<i64: 1>, scalar_prefetch = 0 : i64, scratch_operands = 0 : i64, tpu.core_type = #tpu.core_type<tc>, window_params = [{transform_indices = @transform_0, window_bounds = array<i64: 32, 16>}, {pipeline_mode = #tpu.pipeline_mode<synchronous>, transform_indices = @transform_1, window_bounds = array<i64: 16, 32>}, {pipeline_mode = #tpu.pipeline_mode<synchronous>, transform_indices = @transform_2, window_bounds = array<i64: 1, 32>}, {pipeline_mode = #tpu.pipeline_mode<synchronous>, transform_indices = @transform_3, window_bounds = array<i64: 1, 32>}, {pipeline_mode = #tpu.pipeline_mode<synchronous>, transform_indices = @transform_4, window_bounds = array<i64: 1, 32>}, {pipeline_mode = #tpu.pipeline_mode<synchronous>, transform_indices = @transform_5, window_bounds = array<i64: 32, 32>}, {pipeline_mode = #tpu.pipeline_mode<synchronous>, transform_indices = @transform_6, window_bounds = array<i64: 1, 32>}, {pipeline_mode = #tpu.pipeline_mode<synchronous>, transform_indices = @transform_7, window_bounds = array<i64: 1, 32>}, {pipeline_mode = #tpu.pipeline_mode<synchronous>, transform_indices = @transform_8, window_bounds = array<i64: 1, 32>}, {pipeline_mode = #tpu.pipeline_mode<synchronous>, transform_indices = @transform_9, window_bounds = array<i64: 32, 16>}, {pipeline_mode = #tpu.pipeline_mode<synchronous>, transform_indices = @transform_10, window_bounds = array<i64: 1, 16>}, {transform_indices = @transform_11, window_bounds = array<i64: 32, 16>}]} {
    %c0 = arith.constant 0 : index
    %c0_0 = arith.constant 0 : index
    %0 = vector.load %arg1[%c0, %c0_0] : memref<32x16xbf16, #tpu.memory_space<vmem>>, vector<32x16xbf16>
    %c0_1 = arith.constant 0 : index
    %c0_2 = arith.constant 0 : index
    %1 = vector.load %arg2[%c0_1, %c0_2] : memref<16x32xbf16, #tpu.memory_space<vmem>>, vector<16x32xbf16>
    %cst = arith.constant dense<0.000000e+00> : vector<32x32xf32>
    %2 = tpu.matmul %0, %1, %cst {dimension_numbers = #tpu.dot_dimension_numbers<[1], [0], [0], [1], [0, 0, 1, 1], [], []>} : vector<32x16xbf16>, vector<16x32xbf16>, vector<32x32xf32> -> vector<32x32xf32>
    %c0_3 = arith.constant 0 : index
    %c0_4 = arith.constant 0 : index
    %3 = vector.load %arg3[%c0_3, %c0_4] : memref<1x32xf32, #tpu.memory_space<vmem>>, vector<1x32xf32>
    %4 = vector.broadcast %3 : vector<1x32xf32> to vector<32x32xf32>
    %5 = arith.addf %2, %4 : vector<32x32xf32>
    %cst_5 = arith.constant 0.000000e+00 : f32
    %6 = vector.broadcast %cst_5 : f32 to vector<32x32xf32>
    %7 = arith.maximumf %5, %6 : vector<32x32xf32>
    %cst_6 = arith.constant dense<0.000000e+00> : vector<32xf32>
    %8 = vector.multi_reduction <add>, %7, %cst_6 [1] : vector<32x32xf32> to vector<32xf32>
    %9 = vector.shape_cast %8 : vector<32xf32> to vector<32x1xf32>
    %cst_7 = arith.constant 3.200000e+01 : f32
    %10 = vector.broadcast %cst_7 : f32 to vector<32x1xf32>
    %11 = arith.divf %9, %10 : vector<32x1xf32>
    %12 = arith.mulf %7, %7 : vector<32x32xf32>
    %cst_8 = arith.constant dense<0.000000e+00> : vector<32xf32>
    %13 = vector.multi_reduction <add>, %12, %cst_8 [1] : vector<32x32xf32> to vector<32xf32>
    %14 = vector.shape_cast %13 : vector<32xf32> to vector<32x1xf32>
    %cst_9 = arith.constant 3.200000e+01 : f32
    %15 = vector.broadcast %cst_9 : f32 to vector<32x1xf32>
    %16 = arith.divf %14, %15 : vector<32x1xf32>
    %17 = arith.mulf %11, %11 : vector<32x1xf32>
    %18 = arith.subf %16, %17 : vector<32x1xf32>
    %19 = vector.broadcast %11 : vector<32x1xf32> to vector<32x32xf32>
    %20 = arith.subf %7, %19 : vector<32x32xf32>
    %cst_10 = arith.constant 9.99999974E-6 : f32
    %21 = vector.broadcast %cst_10 : f32 to vector<32x1xf32>
    %22 = arith.addf %18, %21 : vector<32x1xf32>
    %23 = math.rsqrt %22 : vector<32x1xf32>
    %24 = vector.broadcast %23 : vector<32x1xf32> to vector<32x32xf32>
    %25 = arith.mulf %20, %24 : vector<32x32xf32>
    %c0_11 = arith.constant 0 : index
    %c0_12 = arith.constant 0 : index
    %26 = vector.load %arg4[%c0_11, %c0_12] : memref<1x32xf32, #tpu.memory_space<vmem>>, vector<1x32xf32>
    %27 = vector.broadcast %26 : vector<1x32xf32> to vector<32x32xf32>
    %28 = arith.mulf %25, %27 : vector<32x32xf32>
    %c0_13 = arith.constant 0 : index
    %c0_14 = arith.constant 0 : index
    %29 = vector.load %arg5[%c0_13, %c0_14] : memref<1x32xf32, #tpu.memory_space<vmem>>, vector<1x32xf32>
    %30 = vector.broadcast %29 : vector<1x32xf32> to vector<32x32xf32>
    %31 = arith.addf %28, %30 : vector<32x32xf32>
    %32 = arith.truncf %31 : vector<32x32xf32> to vector<32x32xbf16>
    %c0_15 = arith.constant 0 : index
    %c0_16 = arith.constant 0 : index
    %33 = vector.load %arg6[%c0_15, %c0_16] : memref<32x32xbf16, #tpu.memory_space<vmem>>, vector<32x32xbf16>
    %cst_17 = arith.constant dense<0.000000e+00> : vector<32x32xf32>
    %34 = tpu.matmul %32, %33, %cst_17 {dimension_numbers = #tpu.dot_dimension_numbers<[1], [0], [0], [1], [0, 0, 1, 1], [], []>} : vector<32x32xbf16>, vector<32x32xbf16>, vector<32x32xf32> -> vector<32x32xf32>
    %c0_18 = arith.constant 0 : index
    %c0_19 = arith.constant 0 : index
    %35 = vector.load %arg7[%c0_18, %c0_19] : memref<1x32xf32, #tpu.memory_space<vmem>>, vector<1x32xf32>
    %36 = vector.broadcast %35 : vector<1x32xf32> to vector<32x32xf32>
    %37 = arith.addf %34, %36 : vector<32x32xf32>
    %cst_20 = arith.constant 0.000000e+00 : f32
    %38 = vector.broadcast %cst_20 : f32 to vector<32x32xf32>
    %39 = arith.maximumf %37, %38 : vector<32x32xf32>
    %cst_21 = arith.constant dense<0.000000e+00> : vector<32xf32>
    %40 = vector.multi_reduction <add>, %39, %cst_21 [1] : vector<32x32xf32> to vector<32xf32>
    %41 = vector.shape_cast %40 : vector<32xf32> to vector<32x1xf32>
    %cst_22 = arith.constant 3.200000e+01 : f32
    %42 = vector.broadcast %cst_22 : f32 to vector<32x1xf32>
    %43 = arith.divf %41, %42 : vector<32x1xf32>
    %44 = arith.mulf %39, %39 : vector<32x32xf32>
    %cst_23 = arith.constant dense<0.000000e+00> : vector<32xf32>
    %45 = vector.multi_reduction <add>, %44, %cst_23 [1] : vector<32x32xf32> to vector<32xf32>
    %46 = vector.shape_cast %45 : vector<32xf32> to vector<32x1xf32>
    %cst_24 = arith.constant 3.200000e+01 : f32
    %47 = vector.broadcast %cst_24 : f32 to vector<32x1xf32>
    %48 = arith.divf %46, %47 : vector<32x1xf32>
    %49 = arith.mulf %43, %43 : vector<32x1xf32>
    %50 = arith.subf %48, %49 : vector<32x1xf32>
    %51 = vector.broadcast %43 : vector<32x1xf32> to vector<32x32xf32>
    %52 = arith.subf %39, %51 : vector<32x32xf32>
    %cst_25 = arith.constant 9.99999974E-6 : f32
    %53 = vector.broadcast %cst_25 : f32 to vector<32x1xf32>
    %54 = arith.addf %50, %53 : vector<32x1xf32>
    %55 = math.rsqrt %54 : vector<32x1xf32>
    %56 = vector.broadcast %55 : vector<32x1xf32> to vector<32x32xf32>
    %57 = arith.mulf %52, %56 : vector<32x32xf32>
    %c0_26 = arith.constant 0 : index
    %c0_27 = arith.constant 0 : index
    %58 = vector.load %arg8[%c0_26, %c0_27] : memref<1x32xf32, #tpu.memory_space<vmem>>, vector<1x32xf32>
    %59 = vector.broadcast %58 : vector<1x32xf32> to vector<32x32xf32>
    %60 = arith.mulf %57, %59 : vector<32x32xf32>
    %c0_28 = arith.constant 0 : index
    %c0_29 = arith.constant 0 : index
    %61 = vector.load %arg9[%c0_28, %c0_29] : memref<1x32xf32, #tpu.memory_space<vmem>>, vector<1x32xf32>
    %62 = vector.broadcast %61 : vector<1x32xf32> to vector<32x32xf32>
    %63 = arith.addf %60, %62 : vector<32x32xf32>
    %64 = arith.truncf %63 : vector<32x32xf32> to vector<32x32xbf16>
    %c0_30 = arith.constant 0 : index
    %c0_31 = arith.constant 0 : index
    %65 = vector.load %arg10[%c0_30, %c0_31] : memref<32x16xbf16, #tpu.memory_space<vmem>>, vector<32x16xbf16>
    %cst_32 = arith.constant dense<0.000000e+00> : vector<32x16xf32>
    %66 = tpu.matmul %64, %65, %cst_32 {dimension_numbers = #tpu.dot_dimension_numbers<[1], [0], [0], [1], [0, 0, 1, 1], [], []>} : vector<32x32xbf16>, vector<32x16xbf16>, vector<32x16xf32> -> vector<32x16xf32>
    %c0_33 = arith.constant 0 : index
    %c0_34 = arith.constant 0 : index
    %67 = vector.load %arg11[%c0_33, %c0_34] : memref<1x16xf32, #tpu.memory_space<vmem>>, vector<1x16xf32>
    %68 = vector.broadcast %67 : vector<1x16xf32> to vector<32x16xf32>
    %69 = arith.addf %66, %68 : vector<32x16xf32>
    %c0_35 = arith.constant 0 : index
    %c0_36 = arith.constant 0 : index
    %70 = vector.load %arg12[%c0_35, %c0_36] : memref<32x16xf32, #tpu.memory_space<vmem>>, vector<32x16xf32>
    tpu.vector_store %arg12[%c0_35, %c0_36], %69 {strides = array<i32>} : memref<32x16xf32, #tpu.memory_space<vmem>>, vector<32x16xf32>,
    return
  }
  func.func @transform_0(%arg0: i32) -> (i32, i32) {
    %c0_i32 = arith.constant 0 : i32
    %c0_i32_0 = arith.constant 0 : i32
    return %arg0, %c0_i32 : i32, i32
  }
  func.func @transform_1(%arg0: i32) -> (i32, i32) {
    %c0_i32 = arith.constant 0 : i32
    %c0_i32_0 = arith.constant 0 : i32
    %c0_i32_1 = arith.constant 0 : i32
    return %c0_i32, %c0_i32_0 : i32, i32
  }
  func.func @transform_2(%arg0: i32) -> (i32, i32) {
    %c0_i32 = arith.constant 0 : i32
    %c0_i32_0 = arith.constant 0 : i32
    %c0_i32_1 = arith.constant 0 : i32
    return %c0_i32, %c0_i32_0 : i32, i32
  }
  func.func @transform_3(%arg0: i32) -> (i32, i32) {
    %c0_i32 = arith.constant 0 : i32
    %c0_i32_0 = arith.constant 0 : i32
    %c0_i32_1 = arith.constant 0 : i32
    return %c0_i32, %c0_i32_0 : i32, i32
  }
  func.func @transform_4(%arg0: i32) -> (i32, i32) {
    %c0_i32 = arith.constant 0 : i32
    %c0_i32_0 = arith.constant 0 : i32
    %c0_i32_1 = arith.constant 0 : i32
    return %c0_i32, %c0_i32_0 : i32, i32
  }
  func.func @transform_5(%arg0: i32) -> (i32, i32) {
    %c0_i32 = arith.constant 0 : i32
    %c0_i32_0 = arith.constant 0 : i32
    %c0_i32_1 = arith.constant 0 : i32
    return %c0_i32, %c0_i32_0 : i32, i32
  }
  func.func @transform_6(%arg0: i32) -> (i32, i32) {
    %c0_i32 = arith.constant 0 : i32
    %c0_i32_0 = arith.constant 0 : i32
    %c0_i32_1 = arith.constant 0 : i32
    return %c0_i32, %c0_i32_0 : i32, i32
  }
  func.func @transform_7(%arg0: i32) -> (i32, i32) {
    %c0_i32 = arith.constant 0 : i32
    %c0_i32_0 = arith.constant 0 : i32
    %c0_i32_1 = arith.constant 0 : i32
    return %c0_i32, %c0_i32_0 : i32, i32
  }
  func.func @transform_8(%arg0: i32) -> (i32, i32) {
    %c0_i32 = arith.constant 0 : i32
    %c0_i32_0 = arith.constant 0 : i32
    %c0_i32_1 = arith.constant 0 : i32
    return %c0_i32, %c0_i32_0 : i32, i32
  }
  func.func @transform_9(%arg0: i32) -> (i32, i32) {
    %c0_i32 = arith.constant 0 : i32
    %c0_i32_0 = arith.constant 0 : i32
    %c0_i32_1 = arith.constant 0 : i32
    return %c0_i32, %c0_i32_0 : i32, i32
  }
  func.func @transform_10(%arg0: i32) -> (i32, i32) {
    %c0_i32 = arith.constant 0 : i32
    %c0_i32_0 = arith.constant 0 : i32
    %c0_i32_1 = arith.constant 0 : i32
    return %c0_i32, %c0_i32_0 : i32, i32
  }
  func.func @transform_11(%arg0: i32) -> (i32, i32) {
    %c0_i32 = arith.constant 0 : i32
    %c0_i32_0 = arith.constant 0 : i32
    return %arg0, %c0_i32 : i32, i32
  }
}

</mosaic_0001>

<bundles_post_ra>
// kernel: mlp_forward.1
= control target key start
LH: loop header
LB: loop body
LE: loop exit
PB: predicated region body
PF: predicated region fallthrough
CT: control target
= control target key end

     0   :  { %vm68_vm0 = vcmask 130048   ;;  %vm128_vm1 = vcmask 261120   ;;  %s730_s1 = inlined_call_operand.vmem [shape: bf16[16,32], index: 1, kind: input, shape index: {}]   ;;  %s731_s0 = inlined_call_operand.vmem [shape: bf16[32,16], index: 0, kind: input, shape index: {}]   ;;  %s732_s2 = inlined_call_operand.vmem [shape: f32[1,32], index: 2, kind: input, shape index: {}]   ;;  %s733_s5 = inlined_call_operand.vmem [shape: bf16[32,32], index: 5, kind: input, shape index: {}]   ;;  %s734_s3 = inlined_call_operand.vmem [shape: f32[1,32], index: 3, kind: input, shape index: {}]   ;;  %s735_s4 = inlined_call_operand.vmem [shape: f32[1,32], index: 4, kind: input, shape index: {}]   ;;  %s736_s6 = inlined_call_operand.vmem [shape: f32[1,32], index: 6, kind: input, shape index: {}]   ;;  %s737_s9 = inlined_call_operand.vmem [shape: bf16[32,16], index: 9, kind: input, shape index: {}]   ;;  %s738_s7 = inlined_call_operand.vmem [shape: f32[1,32], index: 7, kind: input, shape index: {}]   ;;  %s739_s8 = inlined_call_operand.vmem [shape: f32[1,32], index: 8, kind: input, shape index: {}]   ;;  %s740_s10 = inlined_call_operand.vmem [shape: f32[1,16], index: 10, kind: input, shape index: {}]   ;;  %s741_s11 = inlined_call_operand.vmem [shape: f32[32,16], index: 11, kind: output, shape index: {}]  }
   0x1   :  { %v519_v0 = vld [vmem:[%s730_s1] sm:$0xff]   ;;  %v521_v2 = vld [vmem:[%s731_s0 + $0x8] sm:$0xff]  }
   0x2   :  { %v520_v1 = vld [vmem:[%s731_s0] sm:$0xff]   ;;  %497 = vmatprep.subr.bf16.mxu0 %v519_v0  ;;  %v522_v28 = vld [vmem:[%s733_s5 + $0x8] sm:$0xff]  }
   0x3   :  { %498 = vmatpush3.bf16.msra.mxu0 %v519_v0  ;;  %499 = vmatprep.mubr.msk.bf16.mxu0 %vm68_vm0, %v520_v1  ;;  %v466_v3 = vld [vmem:[%s732_s2] ss:$0 sm:$0xff] }
   0x4   :  { %v523_v29 = vld [vmem:[%s733_s5] sm:$0xff]   ;;  %503 = vmatprep.subr.bf16.mxu1 %v522_v28 }
   0x5   :  { %504 = vmatpush3.bf16.msra.mxu1 %v522_v28  ;;  %v472_v61 = vld [vmem:[%s734_s3] ss:$0 sm:$0xff] }
   0x6   :  { %500 = vmatmul.mubr.msk.bf16.vlgmr.msra.gmra.mxu0 %vm68_vm0, %v521_v2  ;;  %505 = vmatprep.subr.bf16.mxu1 %v523_v29 }
   0x9   :  { %506 = vmatpush3.bf16.msra.mxu1 %v523_v29 }
  0xc6   :  { %v501_v4 = vpop.f32.mrf.mxu0 }
  0xc7   :  { %v118_v5 = vadd.f32 %v501_v4, %v466_v3 }
  0xc8   :  { %v109_v6 = vpop.f32.mrf.mxu0 }
  0xc9   :  { %v616_v7 = vmax.f32 %v118_v5, 0.0  ;;  %v110_v8 = vadd.f32 %v466_v3, %v109_v6  ;;  %v473_v6 = vld [vmem:[%s735_s4] ss:$0 sm:$0xff] }
  0xca   :  { %v502_v9 = vpop.f32.mrf.mxu0 }
  0xcb   :  { %v618_v10 = vmax.f32 %v110_v8, 0.0  ;;  %v121_v11 = vadd.f32 %v502_v9, %v466_v3  ;;  %v135_v12 = vsel %vm128_vm1, %v616_v7, 0.0  ;;  %v148_v25 = vmul.f32 %v616_v7, %v616_v7 }
  0xcc   :  { %136 = vadd.xlane.f32.xlu1 %v135_v12  ;;  %v112_v13 = vpop.f32.mrf.mxu0 }
  0xcd   :  { %v622_v14 = vmax.f32 %v121_v11, 0.0  ;;  %v113_v15 = vadd.f32 %v466_v3, %v112_v13  ;;  %v129_v16 = vsel %vm128_vm1, %v618_v10, 0.0  ;;  %v146_v17 = vmul.f32 %v618_v10, %v618_v10 }
  0xce   :  { %130 = vadd.xlane.f32.xlu0 %v129_v16  ;;  %v156_v27 = vsel %vm128_vm1, %v148_v25, 0.0 }
  0xcf   :  { %v628_v18 = vmax.f32 %v113_v15, 0.0  ;;  %v138_v19 = vsel %vm128_vm1, %v622_v14, 0.0  ;;  %v150_v20 = vsel %vm128_vm1, %v146_v17, 0.0  ;;  %v149_v23 = vmul.f32 %v622_v14, %v622_v14 }
  0xd0   :  { %139 = vadd.xlane.f32.xlu1 %v138_v19 }
  0xd1   :  { %v147_v21 = vmul.f32 %v628_v18, %v628_v18  ;;  %v132_v24 = vsel %vm128_vm1, %v628_v18, 0.0  ;;  %v159_v26 = vsel %vm128_vm1, %v149_v23, 0.0 }
  0xd2   :  { %151 = vadd.xlane.f32.xlu0 %v150_v20 }
  0xd3   :  { %v153_v22 = vsel %vm128_vm1, %v147_v21, 0.0 }
  0xd4   :  { %154 = vadd.xlane.f32.xlu1 %v153_v22 }
  0xd6   :  { %133 = vadd.xlane.f32.xlu0 %v132_v24 }
  0xd8   :  { %160 = vadd.xlane.f32.xlu1 %v159_v26 }
  0xda   :  { %157 = vadd.xlane.f32.xlu0 %v156_v27 }
 0x155   :  { %v137_v30 = vpop.xlane.xlu1 %136 }
 0x156   :  { %v144_v41 = vmul.f32 0.03125, %v137_v30 }
 0x157   :  { %v131_v31 = vpop.xlane.xlu0 %130 }
 0x158   :  { %v142_v32 = vmul.f32 0.03125, %v131_v31  ;;  %v168_v50 = vmul.f32 %v144_v41, %v144_v41  ;;  %v176_v2 = vsub.f32 %v616_v7, %v144_v41 }
 0x159   :  { %v140_v33 = vpop.xlane.xlu1 %139 }
 0x15a   :  { %v166_v35 = vmul.f32 %v142_v32, %v142_v32  ;;  %v145_v37 = vmul.f32 0.03125, %v140_v33  ;;  %v174_v59 = vsub.f32 %v618_v10, %v142_v32 }
 0x15b   :  { %v152_v34 = vpop.xlane.xlu0 %151 }
 0x15c   :  { %v162_v36 = vmul.f32 0.03125, %v152_v34  ;;  %v169_v44 = vmul.f32 %v145_v37, %v145_v37  ;;  %v177_v0 = vsub.f32 %v622_v14, %v145_v37 }
 0x15d   :  { %v155_v38 = vpop.xlane.xlu1 %154 }
 0x15e   :  { %v170_v39 = vsub.f32 %v162_v36, %v166_v35  ;;  %v163_v46 = vmul.f32 0.03125, %v155_v38 }
 0x15f   :  { %v134_v40 = vpop.xlane.xlu0 %133 }
 0x160   :  { %v178_v42 = vadd.f32 1e-05, %v170_v39  ;;  %v143_v43 = vmul.f32 0.03125, %v134_v40 }
 0x161   :  { %v161_v45 = vpop.xlane.xlu1 %160 }
 0x162   :  { %526 = vrsqrt.f32 %v178_v42  ;;  %v167_v47 = vmul.f32 %v143_v43, %v143_v43  ;;  %v165_v48 = vmul.f32 0.03125, %v161_v45  ;;  %v175_v62 = vsub.f32 %v628_v18, %v143_v43  ;;  %v474_v18 = vld [vmem:[%s736_s6] ss:$0 sm:$0xff]  ;;  %v524_v43 = vld [vmem:[%s737_s9 + $0x8] sm:$0xff]  }
 0x163   :  { %v158_v49 = vpop.xlane.xlu0 %157  ;;  %511 = vmatprep.subr.bf16.mxu0 %v524_v43 }
 0x164   :  { %v171_v51 = vsub.f32 %v163_v46, %v167_v47  ;;  %v173_v52 = vsub.f32 %v165_v48, %v169_v44  ;;  %v164_v53 = vmul.f32 0.03125, %v158_v49  ;;  %v525_v44 = vld [vmem:[%s737_s9] sm:$0xff]   ;;  %512 = vmatpush3.bf16.msra.mxu0 %v524_v43 }
 0x165   :  { %513 = vmatprep.subr.bf16.mxu0 %v525_v44 }
 0x166   :  { %v179_v54 = vadd.f32 1e-05, %v171_v51  ;;  %v181_v55 = vadd.f32 1e-05, %v173_v52  ;;  %v172_v56 = vsub.f32 %v164_v53, %v168_v50 }
 0x168   :  { %528 = vrsqrt.f32 %v179_v54  ;;  %v180_v57 = vadd.f32 1e-05, %v172_v56  ;;  %514 = vmatpush3.bf16.msra.mxu0 %v525_v44 }
 0x169   :  { %530 = vrsqrt.f32 %v181_v55 }
 0x16a   :  { %532 = vrsqrt.f32 %v180_v57 }
 0x16f   :  { %v527_v58 = vpop.eup %526 }
 0x170   :  { %v186_v60 = vmul.f32 %v527_v58, %v174_v59 }
 0x172   :  { %v197_v4 = vmul.f32 %v472_v61, %v186_v60 }
 0x174   :  { %v208_v12 = vadd.f32 %v473_v6, %v197_v4 }
 0x175   :  { %v529_v63 = vpop.eup %528 }
 0x176   :  { %v531_v1 = vpop.eup %530  ;;  %v187_v3 = vmul.f32 %v529_v63, %v175_v62 }
 0x177   :  { %v533_v5 = vpop.eup %532  ;;  %v189_v8 = vmul.f32 %v531_v1, %v177_v0 }
 0x178   :  { %v198_v9 = vmul.f32 %v472_v61, %v187_v3  ;;  %v188_v10 = vmul.f32 %v533_v5, %v176_v2 }
 0x179   :  { %v200_v11 = vmul.f32 %v472_v61, %v189_v8 }
 0x17a   :  { %v209_v13 = vadd.f32 %v473_v6, %v198_v9  ;;  %v199_v15 = vmul.f32 %v472_v61, %v188_v10 }
 0x17b   :  { %v211_v14 = vadd.f32 %v473_v6, %v200_v11 }
 0x17c   :  { %v212_v16 = vpack.c.bf16 %v209_v13, %v208_v12  ;;  %v210_v17 = vadd.f32 %v473_v6, %v199_v15  ;;  %v479_v13 = vld [vmem:[%s738_s7] ss:$0 sm:$0xff] }
 0x17e   :  { %507 = vmatprep.mubr.msk.bf16.mxu1 %vm128_vm1, %v212_v16  ;;  %v213_v7 = vpack.c.bf16 %v211_v14, %v210_v17 }
 0x180   :  { %508 = vmatmul.mubr.msk.bf16.vlgmr.msra.gmra.mxu1 %vm128_vm1, %v213_v7 }
 0x240   :  { %v509_v19 = vpop.f32.mrf.mxu1 }
 0x241   :  { %v286_v20 = vadd.f32 %v509_v19, %v474_v18 }
 0x242   :  { %v277_v21 = vpop.f32.mrf.mxu1 }
 0x243   :  { %v665_v22 = vmax.f32 %v286_v20, 0.0  ;;  %v278_v23 = vadd.f32 %v474_v18, %v277_v21  ;;  %v480_v20 = vld [vmem:[%s739_s8] ss:$0 sm:$0xff] }
 0x244   :  { %v510_v24 = vpop.f32.mrf.mxu1 }
 0x245   :  { %v667_v25 = vmax.f32 %v278_v23, 0.0  ;;  %v289_v26 = vadd.f32 %v510_v24, %v474_v18  ;;  %v302_v27 = vsel %vm128_vm1, %v665_v22, 0.0  ;;  %v314_v38 = vmul.f32 %v665_v22, %v665_v22 }
 0x246   :  { %303 = vadd.xlane.f32.xlu0 %v302_v27  ;;  %v280_v28 = vpop.f32.mrf.mxu1 }
 0x247   :  { %v671_v29 = vmax.f32 %v289_v26, 0.0  ;;  %v281_v30 = vadd.f32 %v474_v18, %v280_v28  ;;  %v296_v33 = vsel %vm128_vm1, %v667_v25, 0.0  ;;  %v312_v34 = vmul.f32 %v667_v25, %v667_v25 }
 0x248   :  { %v322_v40 = vsel %vm128_vm1, %v314_v38, 0.0 }
 0x249   :  { %v673_v31 = vmax.f32 %v281_v30, 0.0  ;;  %v305_v32 = vsel %vm128_vm1, %v671_v29, 0.0  ;;  %v316_v36 = vsel %vm128_vm1, %v312_v34, 0.0  ;;  %v315_v41 = vmul.f32 %v671_v29, %v671_v29  ;;  %v481_v34 = vld [vmem:[%s740_s10] ss:$0 sm:$0xff] }
 0x24a   :  { %306 = vadd.xlane.f32.xlu1 %v305_v32  ;;  %297 = vadd.xlane.f32.xlu0 %v296_v33 }
 0x24b   :  { %v299_v35 = vsel %vm128_vm1, %v673_v31, 0.0  ;;  %v313_v37 = vmul.f32 %v673_v31, %v673_v31  ;;  %v325_v42 = vsel %vm128_vm1, %v315_v41, 0.0 }
 0x24d   :  { %v319_v39 = vsel %vm128_vm1, %v313_v37, 0.0 }
 0x24e   :  { %300 = vadd.xlane.f32.xlu1 %v299_v35  ;;  %317 = vadd.xlane.f32.xlu0 %v316_v36 }
 0x252   :  { %320 = vadd.xlane.f32.xlu1 %v319_v39  ;;  %323 = vadd.xlane.f32.xlu0 %v322_v40 }
 0x256   :  { %326 = vadd.xlane.f32.xlu1 %v325_v42 }
 0x2cf   :  { %v304_v45 = vpop.xlane.xlu0 %303 }
 0x2d0   :  { %v310_v49 = vmul.f32 0.03125, %v304_v45 }
 0x2d2   :  { %v334_v56 = vmul.f32 %v310_v49, %v310_v49  ;;  %v342_v17 = vsub.f32 %v665_v22, %v310_v49 }
 0x2d3   :  { %v307_v46 = vpop.xlane.xlu1 %306  ;;  %v298_v47 = vpop.xlane.xlu0 %297 }
 0x2d4   :  { %v308_v48 = vmul.f32 0.03125, %v298_v47  ;;  %v311_v57 = vmul.f32 0.03125, %v307_v46 }
 0x2d6   :  { %v332_v52 = vmul.f32 %v308_v48, %v308_v48  ;;  %v335_v3 = vmul.f32 %v311_v57, %v311_v57  ;;  %v340_v10 = vsub.f32 %v667_v25, %v308_v48  ;;  %v343_v21 = vsub.f32 %v671_v29, %v311_v57 }
 0x2d7   :  { %v301_v50 = vpop.xlane.xlu1 %300  ;;  %v318_v51 = vpop.xlane.xlu0 %317 }
 0x2d8   :  { %v309_v53 = vmul.f32 0.03125, %v301_v50  ;;  %v328_v54 = vmul.f32 0.03125, %v318_v51 }
 0x2da   :  { %v336_v55 = vsub.f32 %v328_v54, %v332_v52  ;;  %v333_v60 = vmul.f32 %v309_v53, %v309_v53  ;;  %v341_v15 = vsub.f32 %v673_v31, %v309_v53 }
 0x2db   :  { %v321_v58 = vpop.xlane.xlu1 %320  ;;  %v324_v59 = vpop.xlane.xlu0 %323 }
 0x2dc   :  { %v344_v61 = vadd.f32 1e-05, %v336_v55  ;;  %v329_v62 = vmul.f32 0.03125, %v321_v58  ;;  %v330_v63 = vmul.f32 0.03125, %v324_v59 }
 0x2de   :  { %534 = vrsqrt.f32 %v344_v61  ;;  %v337_v0 = vsub.f32 %v329_v62, %v333_v60  ;;  %v338_v1 = vsub.f32 %v330_v63, %v334_v56 }
 0x2df   :  { %v327_v2 = vpop.xlane.xlu1 %326 }
 0x2e0   :  { %v345_v4 = vadd.f32 1e-05, %v337_v0  ;;  %v346_v5 = vadd.f32 1e-05, %v338_v1  ;;  %v331_v6 = vmul.f32 0.03125, %v327_v2 }
 0x2e2   :  { %536 = vrsqrt.f32 %v345_v4  ;;  %v339_v8 = vsub.f32 %v331_v6, %v335_v3 }
 0x2e3   :  { %538 = vrsqrt.f32 %v346_v5 }
 0x2e4   :  { %v347_v9 = vadd.f32 1e-05, %v339_v8 }
 0x2e6   :  { %540 = vrsqrt.f32 %v347_v9 }
 0x2eb   :  { %v535_v11 = vpop.eup %534 }
 0x2ec   :  { %v352_v12 = vmul.f32 %v535_v11, %v340_v10 }
 0x2ee   :  { %v363_v18 = vmul.f32 %v479_v13, %v352_v12 }
 0x2ef   :  { %v537_v16 = vpop.eup %536 }
 0x2f0   :  { %v539_v14 = vpop.eup %538  ;;  %v353_v7 = vmul.f32 %v537_v16, %v341_v15  ;;  %v374_v26 = vadd.f32 %v480_v20, %v363_v18 }
 0x2f1   :  { %v354_v19 = vmul.f32 %v539_v14, %v342_v17 }
 0x2f2   :  { %v364_v23 = vmul.f32 %v479_v13, %v353_v7 }
 0x2f3   :  { %v541_v24 = vpop.eup %540  ;;  %v365_v28 = vmul.f32 %v479_v13, %v354_v19 }
 0x2f4   :  { %v355_v25 = vmul.f32 %v541_v24, %v343_v21  ;;  %v375_v27 = vadd.f32 %v480_v20, %v364_v23 }
 0x2f5   :  { %v376_v22 = vadd.f32 %v480_v20, %v365_v28 }
 0x2f6   :  { %v378_v30 = vpack.c.bf16 %v375_v27, %v374_v26  ;;  %v366_v31 = vmul.f32 %v479_v13, %v355_v25 }
 0x2f8   :  { %515 = vmatprep.mubr.msk.bf16.mxu0 %vm128_vm1, %v378_v30  ;;  %v377_v32 = vadd.f32 %v480_v20, %v366_v31 }
 0x2fa   :  { %v379_v33 = vpack.c.bf16 %v377_v32, %v376_v22 }
 0x2fc   :  { %516 = vmatmul.mubr.msk.bf16.vlgmr.msra.gmra.mxu0 %vm128_vm1, %v379_v33 }
 0x3bc   :  { %v517_v29 = vpop.f32.mrf.mxu0 }
 0x3bd   :  { %v452_v35 = vadd.f32 %v517_v29, %v481_v34 }
 0x3be   :  { %v443_v36 = vpop.f32.mrf.mxu0 }
 0x3bf   :  { %460 = vst.msk [vmem:[%s741_s11 + $0x10] sm:$0xff] %vm68_vm0, %v452_v35  ;;  %v444_v37 = vadd.f32 %v481_v34, %v443_v36 }
 0x3c0   :  { %v518_v38 = vpop.f32.mrf.mxu0 }
 0x3c1   :  { %458 = vst.msk [vmem:[%s741_s11] sm:$0xff] %vm68_vm0, %v444_v37  ;;  %v455_v39 = vadd.f32 %v518_v38, %v481_v34 }
 0x3c2   :  { %v446_v40 = vpop.f32.mrf.mxu0 }
 0x3c3   :  { %461 = vst.msk [vmem:[%s741_s11 + $0x18] sm:$0xff] %vm68_vm0, %v455_v39  ;;  %v447_v41 = vadd.f32 %v481_v34, %v446_v40 }
 0x3c5   :  { %459 = vst.msk [vmem:[%s741_s11 + $0x8] sm:$0xff] %vm68_vm0, %v447_v41 }

</bundles_post_ra>
